<compile_context>
chip_gen: v5e
topology: v5e:2x2
jax: 0.10.0
libtpu: 0.0.40
codegen_flags: <defaults>
</compile_context>

<pallas_src>
import functools
import math

import jax
import jax.numpy as jnp
from jax.experimental import pallas as pl
from jax.experimental.pallas import tpu as pltpu


_MOSAIC_VMEM = 64 * 1024 * 1024  # explicit scoped-VMEM budget for the GEMM kernels


# ------------------------------ tiling helper -------------------------------


def _tile(dim, pref):
    """Largest convenient tile <= pref that divides dim (full dim if small)."""
    if dim <= pref:
        return dim
    for cand in (pref, 512, 256, 128, 64, 32, 16, 8):
        if cand <= pref and dim % cand == 0:
            return cand
    return dim


# ----------------------------- Pallas kernels --------------------------------


def _linear_kernel(x_ref, w_ref, b_ref, o_ref, acc_ref, *, activation):
    """Tiled y = act(x @ w + b); f32 accumulator, bf16 MXU inputs."""
    k = pl.program_id(2)

    @pl.when(k == 0)
    def _init():
        acc_ref[...] = jnp.zeros_like(acc_ref)

    acc_ref[...] += jnp.dot(x_ref[...], w_ref[...],
                            preferred_element_type=jnp.float32)

    @pl.when(k == pl.num_programs(2) - 1)
    def _epilogue():
        y = acc_ref[...] + b_ref[...]
        if activation == "gelu":
            # TODO(synk): HF BERT uses exact erf-GELU; tanh approximation used here.
            y = jax.nn.gelu(y, approximate=True)
        elif activation == "relu":
            y = jnp.maximum(y, 0.0)
        elif activation == "tanh":
            y = jnp.tanh(y)
        o_ref[...] = y.astype(o_ref.dtype)


def linear(x, w, b, activation="none", out_dtype=jnp.bfloat16):
    M, K = x.shape
    N = w.shape[1]
    tm, tn = _tile(M, 512), _tile(N, 512)
    tk = K if K <= 1024 else _tile(K, 512)      # full K -> k grid axis collapses
    return pl.pallas_call(
        functools.partial(_linear_kernel, activation=activation),
        out_shape=jax.ShapeDtypeStruct((M, N), out_dtype),
        grid_spec=pltpu.PrefetchScalarGridSpec(
            num_scalar_prefetch=0,
            grid=(M // tm, N // tn, K // tk),
            in_specs=[
                pl.BlockSpec((tm, tk), lambda i, j, k: (i, k)),
                pl.BlockSpec((tk, tn), lambda i, j, k: (k, j)),
                pl.BlockSpec((1, tn), lambda i, j, k: (0, j)),
            ],
            out_specs=pl.BlockSpec((tm, tn), lambda i, j, k: (i, j)),
            scratch_shapes=[pltpu.VMEM((tm, tn), jnp.float32)],
        ),
        compiler_params=pltpu.CompilerParams(
            dimension_semantics=("parallel", "parallel", "arbitrary"),
            vmem_limit_bytes=_MOSAIC_VMEM),
    )(x, w, b.reshape(1, N))


def _linear_res_ln_kernel(x_ref, w_ref, b_ref, res_ref, g_ref, beta_ref,
                          o_ref, acc_ref, *, eps):
    """Fused y = LayerNorm(x @ w + b + residual) * gamma + beta."""
    k = pl.program_id(1)

    @pl.when(k == 0)
    def _init():
        acc_ref[...] = jnp.zeros_like(acc_ref)

    acc_ref[...] += jnp.dot(x_ref[...], w_ref[...],
                            preferred_element_type=jnp.float32)

    @pl.when(k == pl.num_programs(1) - 1)
    def _epilogue():
        y = acc_ref[...] + b_ref[...] + res_ref[...].astype(jnp.float32)
        mu = jnp.mean(y, axis=-1, keepdims=True)
        d = y - mu
        var = jnp.mean(d * d, axis=-1, keepdims=True)
        o_ref[...] = (d * jax.lax.rsqrt(var + eps) * g_ref[...]
                      + beta_ref[...]).astype(o_ref.dtype)


def linear_res_ln(x, w, b, residual, gamma, beta, eps=1e-12,
                  out_dtype=jnp.bfloat16):
    M, K = x.shape
    N = w.shape[1]                      # N = hidden size (LN reduces over it -> untiled)
    tm = _tile(M, 512)
    tk = K if K <= 1024 else _tile(K, 512)
    return pl.pallas_call(
        functools.partial(_linear_res_ln_kernel, eps=eps),
        out_shape=jax.ShapeDtypeStruct((M, N), out_dtype),
        grid_spec=pltpu.PrefetchScalarGridSpec(
            num_scalar_prefetch=0,
            grid=(M // tm, K // tk),
            in_specs=[
                pl.BlockSpec((tm, tk), lambda i, k: (i, k)),
                pl.BlockSpec((tk, N), lambda i, k: (k, 0)),
                pl.BlockSpec((1, N), lambda i, k: (0, 0)),
                pl.BlockSpec((tm, N), lambda i, k: (i, 0)),
                pl.BlockSpec((1, N), lambda i, k: (0, 0)),
                pl.BlockSpec((1, N), lambda i, k: (0, 0)),
            ],
            out_specs=pl.BlockSpec((tm, N), lambda i, k: (i, 0)),
            scratch_shapes=[pltpu.VMEM((tm, N), jnp.float32)],
        ),
        compiler_params=pltpu.CompilerParams(
            dimension_semantics=("parallel", "arbitrary"),
            vmem_limit_bytes=_MOSAIC_VMEM),
    )(x, w, b.reshape(1, N), residual, gamma.reshape(1, N), beta.reshape(1, N))


def _emb_ln_kernel(we_ref, pe_ref, g_ref, b_ref, o_ref, *, eps):
    """Fused embedding sum (word + pos+type) + LayerNorm."""
    x = we_ref[...].astype(jnp.float32) + pe_ref[...]
    mu = jnp.mean(x, axis=-1, keepdims=True)
    d = x - mu
    var = jnp.mean(d * d, axis=-1, keepdims=True)
    o_ref[...] = (d * jax.lax.rsqrt(var + eps) * g_ref[...]
                  + b_ref[...]).astype(o_ref.dtype)


def embed_layernorm(we, pe_te, gamma, beta, B, S, eps=1e-12,
                    out_dtype=jnp.bfloat16):
    """we: (B*S, H) bf16 gathered word embeddings; pe_te: (S, H) f32 pos+type."""
    H = we.shape[1]
    return pl.pallas_call(
        functools.partial(_emb_ln_kernel, eps=eps),
        out_shape=jax.ShapeDtypeStruct((B * S, H), out_dtype),
        grid_spec=pltpu.PrefetchScalarGridSpec(
            num_scalar_prefetch=0,
            grid=(B,),
            in_specs=[
                pl.BlockSpec((S, H), lambda b: (b, 0)),
                pl.BlockSpec((S, H), lambda b: (0, 0)),
                pl.BlockSpec((1, H), lambda b: (0, 0)),
                pl.BlockSpec((1, H), lambda b: (0, 0)),
            ],
            out_specs=pl.BlockSpec((S, H), lambda b: (b, 0)),
        ),
        compiler_params=pltpu.CompilerParams(dimension_semantics=("parallel",)),
    )(we, pe_te, gamma.reshape(1, H), beta.reshape(1, H))


def _qkv_attn_kernel(x_ref, w_ref, b_ref, am_ref, o_ref, *,
                     num_heads, head_dim, scale):
    """Fused QKV projection + multi-head attention for one batch element.

    x_ref : (S, H)  bf16  hidden states of batch element b
    w_ref : (H, 3H) bf16  fused Q|K|V weight
    b_ref : (1, 3H) f32   fused Q|K|V bias
    am_ref: (1, 1, S) f32 additive attention mask (added raw to scores)
    o_ref : (S, H)  bf16  context, standard hidden layout
    """
    nH, Dh = num_heads, head_dim
    H = nH * Dh
    S = x_ref.shape[0]
    x = x_ref[...]
    qkv = (jnp.dot(x, w_ref[...], preferred_element_type=jnp.float32)
           + b_ref[...]).astype(x.dtype)                       # (S, 3H) bf16
    # one head-major relayout per tensor (no per-head lane slicing / concat)
    q = qkv[:, 0 * H:1 * H].reshape(S, nH, Dh).swapaxes(0, 1)  # (nH, S, Dh)
    k = qkv[:, 1 * H:2 * H].reshape(S, nH, Dh).swapaxes(0, 1)
    v = qkv[:, 2 * H:3 * H].reshape(S, nH, Dh).swapaxes(0, 1)
    s = jnp.einsum("nqd,nkd->nqk", q, k,
                   preferred_element_type=jnp.float32) * scale  # (nH, S, S)
    s = s + am_ref[0]                            # raw additive mask (torch semantics)
    m = jnp.max(s, axis=-1, keepdims=True)
    p = jnp.exp(s - m)
    l = jnp.sum(p, axis=-1, keepdims=True)       # (nH, S, 1)
    ctx = jnp.einsum("nqk,nkd->nqd", p.astype(v.dtype), v,
                     preferred_element_type=jnp.float32)        # (nH, S, Dh)
    ctx = ctx * pl.reciprocal(l, approx=True)    # normalize AFTER PV (fewer VPU muls)
    o_ref[...] = ctx.swapaxes(0, 1).reshape(S, H).astype(o_ref.dtype)


def qkv_attention(x, w_qkv, b_qkv, add_mask3, B, S, nH, Dh):
    """x: (B*S, H) bf16; add_mask3: (B, 1, S) f32."""
    H = nH * Dh
    scale = 1.0 / math.sqrt(Dh)
    # TODO(synk): for very long sequences on v7x (64 MiB VMEM), add a query-tiled
    # flash-style grid axis; unnecessary at these shapes.
    return pl.pallas_call(
        functools.partial(_qkv_attn_kernel, num_heads=nH, head_dim=Dh,
                          scale=scale),
        out_shape=jax.ShapeDtypeStruct((B * S, H), jnp.bfloat16),
        grid_spec=pltpu.PrefetchScalarGridSpec(
            num_scalar_prefetch=0,
            grid=(B,),
            in_specs=[
                pl.BlockSpec((S, H), lambda b: (b, 0)),
                pl.BlockSpec((H, 3 * H), lambda b: (0, 0)),
                pl.BlockSpec((1, 3 * H), lambda b: (0, 0)),
                pl.BlockSpec((1, 1, S), lambda b: (b, 0, 0)),
            ],
            out_specs=pl.BlockSpec((S, H), lambda b: (b, 0)),
        ),
        compiler_params=pltpu.CompilerParams(
            dimension_semantics=("parallel",),
            vmem_limit_bytes=_MOSAIC_VMEM),
    )(x, w_qkv, b_qkv.reshape(1, 3 * H), add_mask3)


def _final_kernel(x_ref, wq_ref, bq_ref, wkv_ref, bkv_ref, am_ref, gm_ref,
                  wp_ref, bp_ref, w1_ref, b1_ref, w2_ref, b2_ref, o_ref,
                  *, num_heads, head_dim, scale):
    """Fused CustomSelfAttention (cls-token query only) + BertPooler + classifier.

    Only query row 0 feeds the pooler, so we project Q for row 0 only, K/V for all
    positions, and produce the (1, H) context directly; the pooler tanh and the
    lane-padded Linear(50)+ReLU+Linear(5) head run in the same kernel.
    """
    nH, Dh = num_heads, head_dim
    H = nH * Dh
    x = x_ref[...]                                              # (S, H) bf16
    S = x.shape[0]
    kv = (jnp.dot(x, wkv_ref[...], preferred_element_type=jnp.float32)
          + bkv_ref[...]).astype(x.dtype)                       # (S, 2H)
    k = kv[:, :H].reshape(S, nH, Dh).swapaxes(0, 1)             # (nH, S, Dh)
    v = kv[:, H:].reshape(S, nH, Dh).swapaxes(0, 1)
    q0 = (jnp.dot(x[0:1, :], wq_ref[...], preferred_element_type=jnp.float32)
          + bq_ref[...]).astype(x.dtype)                        # (1, H)
    q = q0.reshape(1, nH, Dh).swapaxes(0, 1)                    # (nH, 1, Dh)
    s = jnp.einsum("nqd,nkd->nqk", q, k,
                   preferred_element_type=jnp.float32) * scale  # (nH, 1, S)
    s = s + am_ref[0]                                           # raw additive mask
    m = jnp.max(s, axis=-1, keepdims=True)
    p = jnp.exp(s - m)
    l = jnp.sum(p, axis=-1, keepdims=True)       # softmax denom BEFORE gabriel mask
    p = p * gm_ref[...]                          # gabriel mask on normalized probs
    ctx = jnp.einsum("nqk,nkd->nqd", p.astype(v.dtype), v,
                     preferred_element_type=jnp.float32)        # (nH, 1, Dh)
    ctx = ctx * pl.reciprocal(l, approx=True)
    ctx = ctx.swapaxes(0, 1).reshape(1, H)                      # (1, H) f32
    # BertPooler (tanh) + Linear(50) + ReLU + Linear(5), lane-padded to 128.
    pooled = jnp.tanh(jnp.dot(ctx.astype(wp_ref.dtype), wp_ref[...],
                              preferred_element_type=jnp.float32) + bp_ref[...])
    h = jnp.maximum(
        jnp.dot(pooled.astype(w1_ref.dtype), w1_ref[...],
                preferred_element_type=jnp.float32) + b1_ref[...], 0.0)
    logits = jnp.dot(h.astype(w2_ref.dtype), w2_ref[...],
                     preferred_element_type=jnp.float32) + b2_ref[...]
    o_ref[...] = logits.reshape(1, 1, -1)


def final_attention_pooler_classifier(x, params, add_mask3, gm_row, B, S, nH, Dh):
    """x: (B*S, H) bf16; returns (B, 5) f32 logits."""
    H = nH * Dh
    scale = 1.0 / math.sqrt(Dh)
    P = params["cls1_w"].shape[1]                 # lane-padded head width (128)
    out = pl.pallas_call(
        functools.partial(_final_kernel, num_heads=nH, head_dim=Dh, scale=scale),
        out_shape=jax.ShapeDtypeStruct((B, 1, P), jnp.float32),
        grid_spec=pltpu.PrefetchScalarGridSpec(
            num_scalar_prefetch=0,
            grid=(B,),
            in_specs=[
                pl.BlockSpec((S, H), lambda b: (b, 0)),
                pl.BlockSpec((H, H), lambda b: (0, 0)),
                pl.BlockSpec((1, H), lambda b: (0, 0)),
                pl.BlockSpec((H, 2 * H), lambda b: (0, 0)),
                pl.BlockSpec((1, 2 * H), lambda b: (0, 0)),
                pl.BlockSpec((1, 1, S), lambda b: (b, 0, 0)),
                pl.BlockSpec((1, S), lambda b: (0, 0)),
                pl.BlockSpec((H, H), lambda b: (0, 0)),
                pl.BlockSpec((1, H), lambda b: (0, 0)),
                pl.BlockSpec((H, P), lambda b: (0, 0)),
                pl.BlockSpec((1, P), lambda b: (0, 0)),
                pl.BlockSpec((P, P), lambda b: (0, 0)),
                pl.BlockSpec((1, P), lambda b: (0, 0)),
            ],
            out_specs=pl.BlockSpec((1, 1, P), lambda b: (b, 0, 0)),
        ),
        compiler_params=pltpu.CompilerParams(dimension_semantics=("parallel",)),
    )(x,
      params["extra_q_w"], params["extra_q_b"].reshape(1, H),
      params["extra_kv_w"], params["extra_kv_b"].reshape(1, 2 * H),
      add_mask3, gm_row,
      params["pooler_w"], params["pooler_b"].reshape(1, H),
      params["cls1_w"], params["cls1_b"].reshape(1, P),
      params["cls2_w"], params["cls2_b"].reshape(1, P))
    return out.reshape(B, P)[:, :5]


# ------------------------------- model glue ----------------------------------


def encoder_layer(x, p, add_mask3, B, S, nH, Dh):
    ctx = qkv_attention(x, p["qkv_w"], p["qkv_b"], add_mask3, B, S, nH, Dh)
    x = linear_res_ln(ctx, p["attn_out_w"], p["attn_out_b"], x,
                      p["ln1_g"], p["ln1_b"])                      # fused proj+res+LN
    inter = linear(x, p["inter_w"], p["inter_b"], activation="gelu")
    x = linear_res_ln(inter, p["out_w"], p["out_b"], x,
                      p["ln2_g"], p["ln2_b"])                      # fused proj+res+LN
    return x


def bert_classifier_forward(params, input_ids, attention_mask, gabriel_mask, cfg):
    B, S = input_ids.shape
    H, nH = cfg["hidden_size"], cfg["num_attention_heads"]
    Dh = H // nH

    # --- BertEmbeddings: table gathers in JAX; sum + LayerNorm fused in Pallas ---
    we = params["word_emb"][input_ids].reshape(B * S, H)            # (B*S, H) bf16
    pe_te = (params["pos_emb"][:S].astype(jnp.float32)
             + params["type_emb"][0].astype(jnp.float32)[None, :])  # (S, H) f32
    x = embed_layernorm(we, pe_te, params["emb_ln_g"], params["emb_ln_b"], B, S)

    # Raw attention_mask added to scores (no -10000 extension, as in the torch module).
    add_mask3 = attention_mask.astype(jnp.float32).reshape(B, 1, S)

    # --- BertEncoder ---
    for lp in params["layers"]:
        x = encoder_layer(x, lp, add_mask3, B, S, nH, Dh)

    # --- CustomSelfAttention (cls query only) + BertPooler + classifier, fused ---
    gm_row = gabriel_mask[0, 0:1, :].astype(jnp.float32)            # (1, S) row-0 mask
    return final_attention_pooler_classifier(x, params, add_mask3, gm_row,
                                              B, S, nH, Dh)


# ---------------------------- parameter init ----------------------------------


def init_params(key, cfg):
    H = cfg["hidden_size"]
    I = cfg["intermediate_size"]
    V = cfg["vocab_size"]
    P = cfg["max_position_embeddings"]
    L = cfg["num_hidden_layers"]

    keys = iter(jax.random.split(key, 64))

    def w(i, o):
        return (0.02 * jax.random.normal(next(keys), (i, o),
                                         jnp.float32)).astype(jnp.bfloat16)

    def b(o):
        return jnp.zeros((o,), jnp.float32)

    params = {
        "word_emb": (0.02 * jax.random.normal(next(keys), (V, H))).astype(jnp.bfloat16),
        "pos_emb": (0.02 * jax.random.normal(next(keys), (P, H))).astype(jnp.bfloat16),
        "type_emb": (0.02 * jax.random.normal(next(keys), (2, H))).astype(jnp.bfloat16),
        "emb_ln_g": jnp.ones((H,), jnp.float32),
        "emb_ln_b": jnp.zeros((H,), jnp.float32),
        "layers": [],
    }
    for _ in range(L):
        params["layers"].append({
            "qkv_w": w(H, 3 * H), "qkv_b": b(3 * H),          # fused Q|K|V
            "attn_out_w": w(H, H), "attn_out_b": b(H),
            "ln1_g": jnp.ones((H,), jnp.float32), "ln1_b": jnp.zeros((H,), jnp.float32),
            "inter_w": w(H, I), "inter_b": b(I),
            "out_w": w(I, H), "out_b": b(H),
            "ln2_g": jnp.ones((H,), jnp.float32), "ln2_b": jnp.zeros((H,), jnp.float32),
        })
    # Extra CustomSelfAttention: Q separate (cls-row only), K|V fused.
    params["extra_q_w"] = w(H, H)
    params["extra_q_b"] = b(H)
    params["extra_kv_w"] = w(H, 2 * H)
    params["extra_kv_b"] = b(2 * H)
    params["pooler_w"] = w(H, H)
    params["pooler_b"] = b(H)

    # Classifier head: real widths 50 and 5, lane-padded to 128 (zeros are inert).
    w1 = 0.02 * jax.random.normal(next(keys), (H, 50), jnp.float32)
    w2 = 0.02 * jax.random.normal(next(keys), (50, 5), jnp.float32)
    params["cls1_w"] = jnp.zeros((H, 128), jnp.bfloat16).at[:, :50].set(
        w1.astype(jnp.bfloat16))
    params["cls1_b"] = jnp.zeros((128,), jnp.float32)
    params["cls2_w"] = jnp.zeros((128, 128), jnp.bfloat16).at[:50, :5].set(
        w2.astype(jnp.bfloat16))
    params["cls2_b"] = jnp.zeros((128,), jnp.float32)
    return params


# ----------------------------------- main -------------------------------------


if __name__ == "__main__":
    cfg = {
        "vocab_size": 128,
        "hidden_size": 128,
        "num_hidden_layers": 2,
        "num_attention_heads": 4,
        "intermediate_size": 256,
        "max_position_embeddings": 16,
    }
    B, S = 2, 8

    key = jax.random.PRNGKey(0)
    pkey, ikey = jax.random.split(key)
    params = init_params(pkey, cfg)

    input_ids = jax.random.randint(ikey, (B, S), 0, cfg["vocab_size"], dtype=jnp.int32)
    attention_mask = jnp.ones((B, S), jnp.int32)
    # gabriel_mask: zeros with a single 1 at [0, 1, 1], like the torch example (S=8)
    gabriel_mask = jnp.zeros((1, S, S), jnp.float32).at[0, 1, 1].set(1.0)

    logits = bert_classifier_forward(params, input_ids, attention_mask,
                                     gabriel_mask, cfg)
    logits = jax.block_until_ready(logits)
    assert logits.shape == (B, 5) and logits.dtype == jnp.float32
    assert bool(jnp.all(jnp.isfinite(logits)))
    print("KERNEL_OK")
</pallas_src>

<mosaic_0001>
module attributes {stable_mosaic.version = 11 : i64} {
  func.func @_emb_ln_kernel(%arg0: i32, %arg1: memref<8x128xbf16, #tpu.memory_space<vmem>>, %arg2: memref<8x128xf32, #tpu.memory_space<vmem>>, %arg3: memref<1x128xf32, #tpu.memory_space<vmem>>, %arg4: memref<1x128xf32, #tpu.memory_space<vmem>>, %arg5: memref<8x128xbf16, #tpu.memory_space<vmem>>) attributes {dimension_semantics = [#tpu.dimension_semantics<parallel>], iteration_bounds = array<i64: 2>, scalar_prefetch = 0 : i64, scratch_operands = 0 : i64, tpu.core_type = #tpu.core_type<tc>, window_params = [{transform_indices = @transform_0, window_bounds = array<i64: 8, 128>}, {pipeline_mode = #tpu.pipeline_mode<synchronous>, transform_indices = @transform_1, window_bounds = array<i64: 8, 128>}, {pipeline_mode = #tpu.pipeline_mode<synchronous>, transform_indices = @transform_2, window_bounds = array<i64: 1, 128>}, {pipeline_mode = #tpu.pipeline_mode<synchronous>, transform_indices = @transform_3, window_bounds = array<i64: 1, 128>}, {transform_indices = @transform_4, window_bounds = array<i64: 8, 128>}]} {
    %c0 = arith.constant 0 : index
    %c0_0 = arith.constant 0 : index
    %0 = vector.load %arg1[%c0, %c0_0] : memref<8x128xbf16, #tpu.memory_space<vmem>>, vector<8x128xbf16>
    %1 = arith.extf %0 : vector<8x128xbf16> to vector<8x128xf32>
    %c0_1 = arith.constant 0 : index
    %c0_2 = arith.constant 0 : index
    %2 = vector.load %arg2[%c0_1, %c0_2] : memref<8x128xf32, #tpu.memory_space<vmem>>, vector<8x128xf32>
    %3 = arith.addf %1, %2 : vector<8x128xf32>
    %cst = arith.constant dense<0.000000e+00> : vector<8xf32>
    %4 = vector.multi_reduction <add>, %3, %cst [1] : vector<8x128xf32> to vector<8xf32>
    %5 = vector.shape_cast %4 : vector<8xf32> to vector<8x1xf32>
    %cst_3 = arith.constant 1.280000e+02 : f32
    %6 = vector.broadcast %cst_3 : f32 to vector<8x1xf32>
    %7 = arith.divf %5, %6 : vector<8x1xf32>
    %8 = vector.broadcast %7 : vector<8x1xf32> to vector<8x128xf32>
    %9 = arith.subf %3, %8 : vector<8x128xf32>
    %10 = arith.mulf %9, %9 : vector<8x128xf32>
    %cst_4 = arith.constant dense<0.000000e+00> : vector<8xf32>
    %11 = vector.multi_reduction <add>, %10, %cst_4 [1] : vector<8x128xf32> to vector<8xf32>
    %12 = vector.shape_cast %11 : vector<8xf32> to vector<8x1xf32>
    %cst_5 = arith.constant 1.280000e+02 : f32
    %13 = vector.broadcast %cst_5 : f32 to vector<8x1xf32>
    %14 = arith.divf %12, %13 : vector<8x1xf32>
    %cst_6 = arith.constant 9.99999996E-13 : f32
    %15 = vector.broadcast %cst_6 : f32 to vector<8x1xf32>
    %16 = arith.addf %14, %15 : vector<8x1xf32>
    %17 = math.rsqrt %16 : vector<8x1xf32>
    %18 = vector.broadcast %17 : vector<8x1xf32> to vector<8x128xf32>
    %19 = arith.mulf %9, %18 : vector<8x128xf32>
    %c0_7 = arith.constant 0 : index
    %c0_8 = arith.constant 0 : index
    %20 = vector.load %arg3[%c0_7, %c0_8] : memref<1x128xf32, #tpu.memory_space<vmem>>, vector<1x128xf32>
    %21 = vector.broadcast %20 : vector<1x128xf32> to vector<8x128xf32>
    %22 = arith.mulf %19, %21 : vector<8x128xf32>
    %c0_9 = arith.constant 0 : index
    %c0_10 = arith.constant 0 : index
    %23 = vector.load %arg4[%c0_9, %c0_10] : memref<1x128xf32, #tpu.memory_space<vmem>>, vector<1x128xf32>
    %24 = vector.broadcast %23 : vector<1x128xf32> to vector<8x128xf32>
    %25 = arith.addf %22, %24 : vector<8x128xf32>
    %26 = arith.truncf %25 : vector<8x128xf32> to vector<8x128xbf16>
    %c0_11 = arith.constant 0 : index
    %c0_12 = arith.constant 0 : index
    %27 = vector.load %arg5[%c0_11, %c0_12] : memref<8x128xbf16, #tpu.memory_space<vmem>>, vector<8x128xbf16>
    tpu.vector_store %arg5[%c0_11, %c0_12], %26 {strides = array<i32>} : memref<8x128xbf16, #tpu.memory_space<vmem>>, vector<8x128xbf16>,
    return
  }
  func.func @transform_0(%arg0: i32) -> (i32, i32) {
    %c0_i32 = arith.constant 0 : i32
    %c0_i32_0 = arith.constant 0 : i32
    return %arg0, %c0_i32 : i32, i32
  }
  func.func @transform_1(%arg0: i32) -> (i32, i32) {
    %c0_i32 = arith.constant 0 : i32
    %c0_i32_0 = arith.constant 0 : i32
    %c0_i32_1 = arith.constant 0 : i32
    return %c0_i32, %c0_i32_0 : i32, i32
  }
  func.func @transform_2(%arg0: i32) -> (i32, i32) {
    %c0_i32 = arith.constant 0 : i32
    %c0_i32_0 = arith.constant 0 : i32
    %c0_i32_1 = arith.constant 0 : i32
    return %c0_i32, %c0_i32_0 : i32, i32
  }
  func.func @transform_3(%arg0: i32) -> (i32, i32) {
    %c0_i32 = arith.constant 0 : i32
    %c0_i32_0 = arith.constant 0 : i32
    %c0_i32_1 = arith.constant 0 : i32
    return %c0_i32, %c0_i32_0 : i32, i32
  }
  func.func @transform_4(%arg0: i32) -> (i32, i32) {
    %c0_i32 = arith.constant 0 : i32
    %c0_i32_0 = arith.constant 0 : i32
    return %arg0, %c0_i32 : i32, i32
  }
}

</mosaic_0001>

<bundles_post_ra>
// kernel: tpu_custom_call.1
= control target key start
LH: loop header
LB: loop body
LE: loop exit
PB: predicated region body
PF: predicated region fallthrough
CT: control target
= control target key end

     0   :  { %9 = vsyncpa [#allocation3], 0  ;;  %s754_s0 = inlined_call_operand.hbm [shape: bf16[16,128], index: 0, kind: input, shape index: {}]   ;;  %s755_s1 = inlined_call_operand.hbm [shape: f32[8,128], index: 1, kind: input, shape index: {}]   ;;  %s756_s2 = inlined_call_operand.vmem [shape: f32[1,128], index: 2, kind: input, shape index: {}]   ;;  %s757_s3 = inlined_call_operand.vmem [shape: f32[1,128], index: 3, kind: input, shape index: {}]   ;;  %s758_s4 = inlined_call_operand.hbm [shape: bf16[16,128], index: 4, kind: output, shape index: {}]  }
   0x1   :  { %11 = vsyncpa [#allocation3 + $0x1], 0 }
   0x2   :  { %12 = vsyncpa [#allocation6], 0 }
   0x3   :  { %13 = vsyncpa [#allocation4], 0 }
   0x4   :  { %15 = vsyncpa [#allocation4 + $0x1], 0  ;;  %s606_s15 = smov 0   ;;  %s608_s16 = smov 0  }
   0x5   :  { %s610_s17 = smov 0   ;;  %s612_s18 = smov 0  }
   0x6 LB: > { %s627_s19 = sadd.s32 4294967295, %s577_s18   ;;  %s369_s20 = sadd.s32 4294967294, %s577_s18   ;;  %s577_s18 = sphi %s612_s18, %s768_s18   ;;  %s573_s17 = sphi %s610_s17, %s767_s17   ;;  %s569_s16 = sphi %s608_s16, %s766_s16   ;;  %s565_s15 = sphi %s606_s15, %s765_s15  }
   0x7   : > { %p41_p0 = scmp.ne.s32.totalorder %s569_s16, %s565_s15  ;;  %p42_p1 = scmp.eq.s32.totalorder %s627_s19, 0 }
   0x8   : > { %p128_p2 = scmp.eq.s32.totalorder %s627_s19, 1  ;;  %p134_p3 = scmp.eq.s32.totalorder %s369_s20, 1 }
   0x9   : > { %p636_p4 = por %p42_p1, %p41_p0  ;;  %p370_p5 = scmp.ge.s32.totalorder %s577_s18, 1 }
   0xa   : > { %p641_p6 = por %p134_p3, %p41_p0  ;;  %p141_p7 = scmp.lt.s32.totalorder %s577_s18, 3 }
   0xb   : > { %s153_s25 = sshll.u32 %s755_s1, 4  ;;  %s579_s27 = smov [#allocation5]   ;;  %s154_s25 = int_to_ptr.hbm [resolvable:$true] %s153_s25 }
   0xc   : > { %p649_p8 = pnand %p370_p5, %p141_p7  ;;  %s155_s28 = sshll.u32 %s579_s27, 4  ;;  %s156_s28 = int_to_ptr.vmem [resolvable:$true] %s155_s28 }
   0xd   : > { %s659_s29 = sadd.s32 1, %s577_s18   ;;  %s28_s30 = sadd.s32 1, %s573_s17 }
   0xe   : > { %p391_p10 = pneg %p649_p8  ;;  %s25_s5 = ssub.s32 %s577_s18, %s659_s29 }
   0xf   : > { %p26_p12 = scmp.eq.s32.totalorder %s25_s5, 0  ;;  %p35_p13 = scmp.ne.s32.totalorder %s573_s17, %s569_s16 }
  0x10   : > { %p392_p11 = pnand %p391_p10, %p42_p1  ;;  %p36_p0 = scmp.eq.s32.totalorder %s577_s18, 0 }
  0x11   : > { %s668_s6 = scalar_select %p26_p12, %s573_s17, %s28_s30  }
  0x12   : > { %394 = dma.hbm_to_vmem [thread:$0]  (!%p392_p11), %s154_s25, 128, %s156_s28, [#allocation6]  }
  0x13   : > { %p672_p3 = por %p128_p2, %p35_p13  ;;  %p404_p5 = scmp.lt.s32.totalorder %s577_s18, 2 }
  0x14   : > { %s172_s8 = sand.u32 1, %s573_s17   ;;  %s374_s9 = sshll.u32 %s577_s18, 2 }
  0x15   : > { %p37_p7 = por %p36_p0, %p35_p13  ;;  %s373_s10 = sshll.u32 %s172_s8, 2 }
  0x16   : > { %s180_s13 = scalar_lea.hbm %s754_s0, %s374_s9  ;;  %s176_s20 = scalar_lea.vmem [#allocation2], %s373_s10 }
  0x17   : > { %s182_s14 = sshll.u32 %s180_s13, 4  ;;  %s184_s23 = sshll.u32 %s176_s20, 4  ;;  %s183_s14 = int_to_ptr.hbm [resolvable:$true] %s182_s14  ;;  %s185_s23 = int_to_ptr.vmem [resolvable:$true] %s184_s23 }
  0x18   : > { %p682_p10 = pnand %p404_p5, %p37_p7  ;;  %s173_s25 = scalar_lea.sflag [#allocation3], %s172_s8 }
  0x19   : > { %s477_s27 = sshra.s32 %s183_s14, 4  ;;  %s484_s9 = scalar_lea.hbm %s754_s0, 8  ;;  %s478_s27 = int_to_ptr.hbm [resolvable:$true] %s477_s27 }
  0x1a   : > { %s479_s28 = scalar_lea.hbm %s478_s27, 4  ;;  %p481_p11 = pneg %p682_p10 }
  0x1b   : > { %p480_p2 = scmp.ne.s32.totalorder %s478_s27, %s479_s28  ;;  %p485_p0 = scmp.lt.s32.totalorder %s478_s27, %s754_s0 }
  0x1c   : > { %p486_p5 = scmp.lt.s32.totalorder %s484_s9, %s479_s28 }
  0x1d   : > { %p482_p12 = pnand %p481_p11, %p480_p2 }
  0x1e   : > { %p487_p7 = por %p486_p5, %p485_p0 }
  0x1f   : > { %p483_p13 = pneg %p482_p12 }
  0x21   : > { %p488_p9 = pnand %p487_p7, %p483_p13 }
  0x23   : > { %491 = shalt.err (!%p488_p9)
}
  0x24   : > { %398 = dma.hbm_to_vmem [thread:$0]  (!%p682_p10), %s183_s14, 64, %s185_s23, %s173_s25  }
  0x25   : > { %193 = sbr.rel (%p649_p8) target bundleno = 321 (0x141), region = 36  ;;  %s699_s8 = sand.u32 (!%p649_p8), 1, %s569_s16  }
  0x26   : > { %s376_s12 = sshll.u32 (!%p649_p8), %s699_s8, 2  ;;  %s196_s13 = scalar_lea.sflag (!%p649_p8), [#allocation3], %s699_s8 }
  0x27   : > { %s199_s20 = scalar_lea.vmem (!%p649_p8), [#allocation2], %s376_s12 }
  0x2a   : > { %552 = dma.done.wait (%p636_p4), %s196_s13, 64  }
  0x2b   : > { %554 = vsyncadd (%p636_p4), %s196_s13, 4294967232 }
  0x2c   : > { %556 = dma.done.wait (%p42_p1), [#allocation6], 128  }
  0x2d   : > { %558 = vsyncadd (%p42_p1), [#allocation6], 4294967168  ;;  %v230_v0 = vld [vmem:[%s199_s20] sm:$0xf]  ;;  %v232_v1 = vld [vmem:[#allocation5] sm:$0xff]  ;;  %v580_v4 = vmov 128.0  }
  0x2e   : > { %v231_v2 = vunpack.c.l.bf16 %v230_v0  ;;  %443 = vrcp.f32 %v580_v4  ;;  %s380_s21 = sshll.u32 %s627_s19, 2  ;;  %v441_v24 = vld [vmem:[%s756_s2] ss:$0 sm:$0xff]  ;;  %s229_s19 = scalar_lea.vmem [#allocation7], %s376_s12 }
  0x2f   : > { %v442_v27 = vld [vmem:[%s757_s3] ss:$0 sm:$0xff]  ;;  %s284_s28 = scalar_lea.hbm %s758_s4, %s380_s21  ;;  %s286_s30 = sshll.u32 %s229_s19, 4  ;;  %s287_s30 = int_to_ptr.vmem [resolvable:$true] %s286_s30 }
  0x30   : > { %v233_v3 = vadd.f32 %v232_v1, %v231_v2  ;;  %s288_s5 = sshll.u32 %s284_s28, 4  ;;  %s274_s9 = scalar_lea.sflag [#allocation4], %s699_s8  ;;  %s289_s5 = int_to_ptr.hbm [resolvable:$true] %s288_s5 }
  0x31   : > { %s521_s10 = sshra.s32 %s289_s5, 4  ;;  %s527_s21 = scalar_lea.hbm %s758_s4, 8  ;;  %s522_s10 = int_to_ptr.hbm [resolvable:$true] %s521_s10 }
  0x32   : > { %234 = vadd.xlane.f32.xlu0 %v233_v3  ;;  %s523_s11 = scalar_lea.hbm %s522_s10, 4  ;;  %p528_p9 = scmp.lt.s32.totalorder %s522_s10, %s758_s4 }
  0x33   : > { %p524_p1 = scmp.ne.s32.totalorder %s522_s10, %s523_s11  ;;  %p529_p10 = scmp.lt.s32.totalorder %s527_s21, %s523_s11 }
  0x34   : > { %v444_v5 = vpop.eup %443 }
  0x35   : > { %v237_v6 = vmul.f32 128.0, %v444_v5  ;;  %vm241_vm0 = vweird.f32 %v444_v5  ;;  %p525_p4 = pnand %p524_p1, %p672_p3  ;;  %p530_p2 = por %p529_p10, %p528_p9 }
  0x37   : > { %v238_v7 = vsub.f32 1.0, %v237_v6  ;;  %p526_p8 = pneg %p525_p4 }
  0x39   : > { %v239_v8 = vmul.f32 %v444_v5, %v238_v7  ;;  %p531_p11 = pnand %p530_p2, %p526_p8 }
  0x3b   : > { %v240_v9 = vadd.f32 %v444_v5, %v239_v8 }
  0x3d   : > { %v242_v10 = vsel %vm241_vm0, %v444_v5, %v240_v9 }
  0xa5   : > { %v235_v11 = vpop.xlane.xlu0 %234 }
  0xa6   : > { %v243_v12 = vmul.f32 %v242_v10, %v235_v11 }
  0xa8   : > { %v244_v13 = vsub.f32 %v233_v3, %v243_v12 }
  0xaa   : > { %v245_v14 = vmul.f32 %v244_v13, %v244_v13 }
  0xac   : > { %246 = vadd.xlane.f32.xlu0 %v245_v14 }
 0x11f   : > { %v247_v15 = vpop.xlane.xlu0 %246 }
 0x120   : > { %v248_v16 = vmul.f32 %v247_v15, %v242_v10 }
 0x122   : > { %v249_v17 = vadd.f32 1e-12, %v248_v16 }
 0x124   : > { %445 = vrsqrt.f32 %v249_v17  ;;  %vm256_vm2 = vweird.f32 %v249_v17 }
 0x12a   : > { %v446_v18 = vpop.eup %445 }
 0x12b   : > { %v251_v19 = vmul.f32 %v446_v18, %v249_v17  ;;  %vm257_vm1 = vweird.f32 %v446_v18 }
 0x12c   : > { %vm258_vm3 = vmor %vm256_vm2, %vm257_vm1 }
 0x12d   : > { %v252_v20 = vmul.f32 %v446_v18, %v251_v19 }
 0x12f   : > { %v253_v21 = vmul.f32 0.5, %v252_v20 }
 0x131   : > { %v254_v22 = vsub.f32 1.5, %v253_v21 }
 0x133   : > { %v255_v23 = vmul.f32 %v446_v18, %v254_v22 }
 0x135   : > { %v259_v25 = vsel %vm258_vm3, %v446_v18, %v255_v23 }
 0x136   : > { %v260_v26 = vmul.f32 %v259_v25, %v244_v13 }
 0x138   : > { %v265_v28 = vmul.f32 %v441_v24, %v260_v26 }
 0x13a   : > { %v270_v29 = vadd.f32 %v442_v27, %v265_v28 }
 0x13c   : > { %v271_v30 = vpack.c.bf16 %v270_v29, %v270_v29 }
 0x13e   : > { %272 = vst [vmem:[%s229_s19] sm:$0xf] %v271_v30 }
 0x13f   : > { %534 = shalt.err (!%p531_p11)
}
 0x140   : > { %389 = dma.vmem_to_hbm [thread:$0]  (%p672_p3), %s287_s30, 64, %s289_s5, %s274_s9  }
 0x141 PF: > { %s300_s8 = sand.u32 1, %s565_s15   ;;  %p764_p12 = scmp.ge.s32.totalorder %s577_s18, 2 }
 0x142   : > { %s301_s14 = scalar_lea.sflag [#allocation4], %s300_s8 }
 0x143   : > { %p400_p13 = pnand %p764_p12, %p641_p6 }
 0x145   : > { %p401_p0 = pneg %p400_p13 }
 0x147   : > { %560 = dma.done.wait (%p401_p0), %s301_s14, 64  }
 0x148   : > { %562 = vsyncadd (%p401_p0), %s301_s14, 4294967232  ;;  %p18_p5 = scmp.ge.s32.totalorder %s659_s29, 4   ;;  %s765_s15 = smov %s569_s16 }
 0x149   : > { %s766_s16 = smov %s573_s17  ;;  %s767_s17 = smov %s668_s6 }
 0x14a   : > { %s768_s18 = smov %s659_s29  ;;  %20 = sbr.rel (!%p18_p5) target bundleno = 6 (0x6), region = 85 }
 0x14f   :  { %307 = vsyncpa [#allocation3], 1 }
 0x150   :  { %309 = vsyncpa [#allocation3 + $0x1], 1 }
 0x151   :  { %310 = vsyncpa [#allocation6], 1 }
 0x152   :  { %311 = vsyncpa [#allocation4], 1 }
 0x153   :  { %313 = vsyncpa [#allocation4 + $0x1], 1 }

</bundles_post_ra>
